<compile_context>
chip_gen: v7x
topology: tpu7x:2x2x1
jax: 0.10.0
libtpu: 0.0.40
codegen_flags: <defaults>
</compile_context>

<pallas_src>
import functools

import jax
import jax.numpy as jnp
from jax import lax
from jax.experimental import pallas as pl
from jax.experimental.pallas import tpu as pltpu

FEATURE = 256        # stand-in for 2048 of the original module (multiple of 128)
N_CLASSES = 18
LANE = 128
NEG_BIG = -1e30      # bias for padded classifier lanes -> exp() underflows to exactly 0


# --------------------------------------------------------------------------- #
# Pallas fusion kernel
# --------------------------------------------------------------------------- #
def _fusion_kernel(dnm_ref, rnm_ref, tnm_ref, s_ref, w_ref, b_ref, out_ref, *, feature):
    # dnm/rnm/tnm : (TB, F) bf16   -- per-view nm features
    # s_ref       : (TB, 128) f32  -- lanes 0,1,2 hold s_d, s_r, s_t (per-row an means)
    # w_ref       : (3F, C_PAD) bf16 (pool folded into classifier, zero-padded cols)
    # b_ref       : (1, C_PAD)  f32  (padded lanes carry NEG_BIG)
    # out_ref     : (TB, C_PAD) f32  softmax probabilities (padded lanes -> 0)
    F = feature
    s = s_ref[...]                                                     # (TB, 128)

    # Three (TB,F)@(F,C_PAD) bf16 MXU dots, f32 accumulate; per-row scale applied on
    # the tiny (TB, C_PAD) f32 results (VPU, hides under DMA slack).
    logits = (
        s[:, 0:1] * jnp.dot(dnm_ref[...], w_ref[0 * F:1 * F, :],
                            preferred_element_type=jnp.float32)
        + s[:, 1:2] * jnp.dot(rnm_ref[...], w_ref[1 * F:2 * F, :],
                              preferred_element_type=jnp.float32)
        + s[:, 2:3] * jnp.dot(tnm_ref[...], w_ref[2 * F:3 * F, :],
                              preferred_element_type=jnp.float32)
        + b_ref[...])                                                  # (TB, C_PAD)

    # softmax over the (padded) class lanes; padded lanes carry NEG_BIG -> exp == 0.
    m = jnp.max(logits, axis=-1, keepdims=True)
    e = jnp.exp(logits - m)
    out_ref[...] = e / jnp.sum(e, axis=-1, keepdims=True)              # exact normalization


# --------------------------------------------------------------------------- #
# Host-side folding of AdaptiveAvgPool2d column bins into the classifier.
# Precompute ONCE (hoisted out of the per-inference path).
# --------------------------------------------------------------------------- #
def fold_classifier(cls_w, cls_b):
    # pooled[j] = mean(v[3j:3j+3])  =>  v @ W_fold with W_fold[k] = W[k // 3] / 3.
    F, C = cls_w.shape
    c_pad = ((C + LANE - 1) // LANE) * LANE
    w_fold = jnp.repeat(cls_w.astype(jnp.float32), 3, axis=0) / 3.0     # (3F, C)
    w_fold = jnp.pad(w_fold, ((0, 0), (0, c_pad - C))).astype(jnp.bfloat16)
    b_pad = jnp.concatenate(
        [cls_b.astype(jnp.float32),
         jnp.full((c_pad - C,), NEG_BIG, jnp.float32)]).reshape(1, c_pad)
    return w_fold, b_pad


def fusion_pallas(d_nm, d_an, r_nm, r_an, t_nm, t_an, w_fold, b_pad, n_classes):
    bs, F = d_nm.shape
    c_pad = w_fold.shape[1]

    # Per-view scalar means computed in f32 in the wrapper (exact, an never enters the
    # kernel).  In production this fold can move all the way into the backbone head
    # (s = h @ mean(an_w, axis=1) + mean(an_b)) so the full `an` is never materialized.
    scales = jnp.stack([jnp.mean(d_an.astype(jnp.float32), axis=-1),
                        jnp.mean(r_an.astype(jnp.float32), axis=-1),
                        jnp.mean(t_an.astype(jnp.float32), axis=-1)], axis=-1)  # (bs, 3) f32

    # Batch tiling: TB multiple of 16 (bf16 sublane packing), capped at 256; a single
    # grid step unless the batch is large.  When there are multiple steps each has
    # >= 256 rows, so v7x megacore sharding ("parallel") is worthwhile; tiny batches
    # are never split into serial per-step overhead on v5e/v6e.
    bs16 = ((bs + 15) // 16) * 16
    TB = min(bs16, 256)
    n_blk = pl.cdiv(bs16, TB)
    bs_pad = n_blk * TB

    def pad_rows(x):
        return jnp.pad(x, ((0, bs_pad - bs), (0, 0))) if bs_pad != bs else x

    d_nm = pad_rows(d_nm.astype(jnp.bfloat16))
    r_nm = pad_rows(r_nm.astype(jnp.bfloat16))
    t_nm = pad_rows(t_nm.astype(jnp.bfloat16))
    scales = pad_rows(jnp.pad(scales, ((0, 0), (0, LANE - 3))))         # (bs_pad, 128) f32

    # Pipelined-working-set estimate (double-buffered inputs/outputs).
    vmem_est = (3 * 2 * TB * F * 2           # three nm views, bf16, x2 buffers
                + 2 * TB * LANE * 4          # scales
                + 2 * 3 * F * c_pad * 2      # folded weights (constant index_map)
                + 2 * c_pad * 4              # bias
                + 2 * TB * c_pad * 4)        # output
    compiler_kwargs = dict(dimension_semantics=("parallel",))
    if vmem_est > 12 * 1024 * 1024:
        # Only kicks in at production scale (e.g. F=2048, TB=256 exceeds v5e's 16 MiB
        # default scoped VMEM).  Keep headroom below v7x's 64 MiB physical VMEM.
        compiler_kwargs["vmem_limit_bytes"] = min(int(vmem_est * 3 // 2), 48 * 1024 * 1024)

    out = pl.pallas_call(
        functools.partial(_fusion_kernel, feature=F),
        out_shape=jax.ShapeDtypeStruct((bs_pad, c_pad), jnp.float32),
        grid_spec=pltpu.PrefetchScalarGridSpec(
            num_scalar_prefetch=0,
            grid=(n_blk,),
            in_specs=[
                pl.BlockSpec((TB, F), lambda i: (i, 0)),
                pl.BlockSpec((TB, F), lambda i: (i, 0)),
                pl.BlockSpec((TB, F), lambda i: (i, 0)),
                pl.BlockSpec((TB, LANE), lambda i: (i, 0)),
                # constant index_map: folded weights / bias are fetched once, not per step.
                # TODO(synk): on VMEM-tight configs (F=2048 on v5e/v7x) these two specs can
                # additionally take pipeline_mode=pl.Buffered(1) to drop the unused 2nd buffer.
                pl.BlockSpec((3 * F, c_pad), lambda i: (0, 0)),
                pl.BlockSpec((1, c_pad), lambda i: (0, 0)),
            ],
            out_specs=pl.BlockSpec((TB, c_pad), lambda i: (i, 0)),
        ),
        compiler_params=pltpu.CompilerParams(**compiler_kwargs),
    )(d_nm, r_nm, t_nm, scales, w_fold, b_pad)

    return out[:bs, :n_classes]


# --------------------------------------------------------------------------- #
# R3D_MLP stand-in (plain JAX glue feeding the fusion kernel)
# TODO(synk): R3D_MLP is not defined in the reference file; this is a synthetic
# Conv3D + global-pool + MLP stand-in producing the (nm, an) feature pair.
# --------------------------------------------------------------------------- #
def init_r3d_mlp(key, in_ch, conv_ch, feature):
    k = jax.random.split(key, 6)
    s = 0.05
    return {
        "conv_w": s * jax.random.normal(k[0], (conv_ch, in_ch, 3, 3, 3), jnp.float32),
        "conv_b": jnp.zeros((conv_ch,), jnp.float32),
        "fc_w": s * jax.random.normal(k[1], (conv_ch, feature), jnp.float32),
        "fc_b": jnp.zeros((feature,), jnp.float32),
        "nm_w": s * jax.random.normal(k[2], (feature, feature), jnp.float32),
        "nm_b": s * jax.random.normal(k[3], (feature,), jnp.float32),
        "an_w": s * jax.random.normal(k[4], (feature, feature), jnp.float32),
        "an_b": s * jax.random.normal(k[5], (feature,), jnp.float32),
    }


def r3d_mlp_apply(params, x):
    # x: (bs, C, T, H, W)  -- NCDHW, like PyTorch
    y = lax.conv_general_dilated(
        x, params["conv_w"], window_strides=(1, 2, 2), padding="SAME",
        dimension_numbers=("NCDHW", "OIDHW", "NCDHW"))
    y = jax.nn.relu(y + params["conv_b"][None, :, None, None, None])
    feat = jnp.mean(y, axis=(2, 3, 4))                                  # (bs, conv_ch)
    h = jax.nn.relu(feat @ params["fc_w"] + params["fc_b"])             # (bs, feature)
    # nm head emits bf16 directly (the fusion kernel consumes it in bf16: no extra
    # HBM round-trip for a wrapper-side cast/concat); an stays f32, only its mean is used.
    nm = (h @ params["nm_w"] + params["nm_b"]).astype(jnp.bfloat16)
    an = h @ params["an_w"] + params["an_b"]
    return nm, an


# --------------------------------------------------------------------------- #
if __name__ == "__main__":
    key = jax.random.PRNGKey(0)
    bs, in_ch, T, H, W = 24, 3, 4, 16, 16     # bs=24 -> TB=32 (16-aligned), single grid step
    conv_ch = 8

    kd, kr, kt, kc, kx1, kx2, kx3 = jax.random.split(key, 7)
    dash_params = init_r3d_mlp(kd, in_ch, conv_ch, FEATURE)
    rear_params = init_r3d_mlp(kr, in_ch, conv_ch, FEATURE)
    right_params = init_r3d_mlp(kt, in_ch, conv_ch, FEATURE)

    kcw, kcb = jax.random.split(kc)
    cls_w = 0.05 * jax.random.normal(kcw, (FEATURE, N_CLASSES), jnp.float32)
    cls_b = 0.05 * jax.random.normal(kcb, (N_CLASSES,), jnp.float32)

    x_dash = jax.random.normal(kx1, (bs, in_ch, T, H, W), jnp.float32)
    x_rear = jax.random.normal(kx2, (bs, in_ch, T, H, W), jnp.float32)
    x_right = jax.random.normal(kx3, (bs, in_ch, T, H, W), jnp.float32)

    # backbones (glue, plain JAX)
    d_nm, d_an = r3d_mlp_apply(dash_params, x_dash)
    r_nm, r_an = r3d_mlp_apply(rear_params, x_rear)
    t_nm, t_an = r3d_mlp_apply(right_params, x_right)

    # classifier fold precomputed once (hoisted out of the per-call path)
    w_fold, b_pad = fold_classifier(cls_w, cls_b)

    # fusion forward in the Pallas kernel
    probs = fusion_pallas(d_nm, d_an, r_nm, r_an, t_nm, t_an, w_fold, b_pad, N_CLASSES)
    probs = jax.block_until_ready(probs)

    # pure-JAX reference of the fusion forward (mirrors the PyTorch graph, same inputs)
    def reference():
        def outer(an, nm):
            return jnp.einsum("bi,bj->bij",
                              an.astype(jnp.float32), nm.astype(jnp.float32))
        x = jnp.concatenate(
            [outer(d_an, d_nm), outer(r_an, r_nm), outer(t_an, t_nm)], axis=2)  # (bs, F, 3F)
        x = jnp.mean(x, axis=1)                                  # pool rows -> (bs, 3F)
        x = jnp.mean(x.reshape(bs, FEATURE, 3), axis=-1)         # 3-wide column bins -> (bs, F)
        logits = jnp.matmul(x, cls_w, precision=lax.Precision.HIGHEST) + cls_b
        return jax.nn.softmax(logits, axis=1)

    ref = jax.block_until_ready(reference())

    assert probs.shape == (bs, N_CLASSES)
    assert bool(jnp.all(jnp.isfinite(probs)))
    # exact softmax normalization in the kernel -> rows sum to 1 within f32 rounding
    assert bool(jnp.allclose(jnp.sum(probs, axis=1), 1.0, atol=1e-4))
    # bf16 feature/weight transfer + MXU accumulate vs f32 HIGHEST reference
    assert bool(jnp.allclose(probs, ref, atol=2e-3, rtol=2e-2))
    print("KERNEL_OK")
</pallas_src>

<mosaic_0001>
module attributes {stable_mosaic.version = 11 : i64} {
  func.func @_fusion_kernel(%arg0: i32, %arg1: memref<32x256xbf16, #tpu.memory_space<vmem>>, %arg2: memref<32x256xbf16, #tpu.memory_space<vmem>>, %arg3: memref<32x256xbf16, #tpu.memory_space<vmem>>, %arg4: memref<32x128xf32, #tpu.memory_space<vmem>>, %arg5: memref<768x128xbf16, #tpu.memory_space<vmem>>, %arg6: memref<1x128xf32, #tpu.memory_space<vmem>>, %arg7: memref<32x128xf32, #tpu.memory_space<vmem>>) attributes {dimension_semantics = [#tpu.dimension_semantics<parallel>], iteration_bounds = array<i64: 1>, scalar_prefetch = 0 : i64, scratch_operands = 0 : i64, tpu.core_type = #tpu.core_type<tc>, window_params = [{transform_indices = @transform_0, window_bounds = array<i64: 32, 256>}, {transform_indices = @transform_1, window_bounds = array<i64: 32, 256>}, {transform_indices = @transform_2, window_bounds = array<i64: 32, 256>}, {transform_indices = @transform_3, window_bounds = array<i64: 32, 128>}, {pipeline_mode = #tpu.pipeline_mode<synchronous>, transform_indices = @transform_4, window_bounds = array<i64: 768, 128>}, {pipeline_mode = #tpu.pipeline_mode<synchronous>, transform_indices = @transform_5, window_bounds = array<i64: 1, 128>}, {transform_indices = @transform_6, window_bounds = array<i64: 32, 128>}]} {
    %c0 = arith.constant 0 : index
    %c0_0 = arith.constant 0 : index
    %0 = vector.load %arg4[%c0, %c0_0] : memref<32x128xf32, #tpu.memory_space<vmem>>, vector<32x128xf32>
    %1 = vector.extract_strided_slice %0 {offsets = [0, 0], sizes = [32, 1], strides = [1, 1]} : vector<32x128xf32> to vector<32x1xf32>
    %c0_1 = arith.constant 0 : index
    %c0_2 = arith.constant 0 : index
    %2 = vector.load %arg1[%c0_1, %c0_2] : memref<32x256xbf16, #tpu.memory_space<vmem>>, vector<32x256xbf16>
    %c0_3 = arith.constant 0 : index
    %c0_4 = arith.constant 0 : index
    %3 = vector.load %arg5[%c0_3, %c0_4] : memref<768x128xbf16, #tpu.memory_space<vmem>>, vector<256x128xbf16>
    %cst = arith.constant dense<0.000000e+00> : vector<32x128xf32>
    %4 = tpu.matmul %2, %3, %cst {dimension_numbers = #tpu.dot_dimension_numbers<[1], [0], [0], [1], [0, 0, 1, 1], [], []>} : vector<32x256xbf16>, vector<256x128xbf16>, vector<32x128xf32> -> vector<32x128xf32>
    %5 = vector.broadcast %1 : vector<32x1xf32> to vector<32x128xf32>
    %6 = arith.mulf %5, %4 : vector<32x128xf32>
    %7 = vector.extract_strided_slice %0 {offsets = [0, 1], sizes = [32, 1], strides = [1, 1]} : vector<32x128xf32> to vector<32x1xf32>
    %c0_5 = arith.constant 0 : index
    %c0_6 = arith.constant 0 : index
    %8 = vector.load %arg2[%c0_5, %c0_6] : memref<32x256xbf16, #tpu.memory_space<vmem>>, vector<32x256xbf16>
    %c256 = arith.constant 256 : index
    %c0_7 = arith.constant 0 : index
    %9 = vector.load %arg5[%c256, %c0_7] : memref<768x128xbf16, #tpu.memory_space<vmem>>, vector<256x128xbf16>
    %cst_8 = arith.constant dense<0.000000e+00> : vector<32x128xf32>
    %10 = tpu.matmul %8, %9, %cst_8 {dimension_numbers = #tpu.dot_dimension_numbers<[1], [0], [0], [1], [0, 0, 1, 1], [], []>} : vector<32x256xbf16>, vector<256x128xbf16>, vector<32x128xf32> -> vector<32x128xf32>
    %11 = vector.broadcast %7 : vector<32x1xf32> to vector<32x128xf32>
    %12 = arith.mulf %11, %10 : vector<32x128xf32>
    %13 = arith.addf %6, %12 : vector<32x128xf32>
    %14 = vector.extract_strided_slice %0 {offsets = [0, 2], sizes = [32, 1], strides = [1, 1]} : vector<32x128xf32> to vector<32x1xf32>
    %c0_9 = arith.constant 0 : index
    %c0_10 = arith.constant 0 : index
    %15 = vector.load %arg3[%c0_9, %c0_10] : memref<32x256xbf16, #tpu.memory_space<vmem>>, vector<32x256xbf16>
    %c512 = arith.constant 512 : index
    %c0_11 = arith.constant 0 : index
    %16 = vector.load %arg5[%c512, %c0_11] : memref<768x128xbf16, #tpu.memory_space<vmem>>, vector<256x128xbf16>
    %cst_12 = arith.constant dense<0.000000e+00> : vector<32x128xf32>
    %17 = tpu.matmul %15, %16, %cst_12 {dimension_numbers = #tpu.dot_dimension_numbers<[1], [0], [0], [1], [0, 0, 1, 1], [], []>} : vector<32x256xbf16>, vector<256x128xbf16>, vector<32x128xf32> -> vector<32x128xf32>
    %18 = vector.broadcast %14 : vector<32x1xf32> to vector<32x128xf32>
    %19 = arith.mulf %18, %17 : vector<32x128xf32>
    %20 = arith.addf %13, %19 : vector<32x128xf32>
    %c0_13 = arith.constant 0 : index
    %c0_14 = arith.constant 0 : index
    %21 = vector.load %arg6[%c0_13, %c0_14] : memref<1x128xf32, #tpu.memory_space<vmem>>, vector<1x128xf32>
    %22 = vector.broadcast %21 : vector<1x128xf32> to vector<32x128xf32>
    %23 = arith.addf %20, %22 : vector<32x128xf32>
    %cst_15 = arith.constant dense<0xFF800000> : vector<32xf32>
    %24 = vector.multi_reduction <maximumf>, %23, %cst_15 [1] : vector<32x128xf32> to vector<32xf32>
    %25 = vector.shape_cast %24 : vector<32xf32> to vector<32x1xf32>
    %26 = vector.broadcast %25 : vector<32x1xf32> to vector<32x128xf32>
    %27 = arith.subf %23, %26 : vector<32x128xf32>
    %28 = math.exp %27 : vector<32x128xf32>
    %cst_16 = arith.constant dense<0.000000e+00> : vector<32xf32>
    %29 = vector.multi_reduction <add>, %28, %cst_16 [1] : vector<32x128xf32> to vector<32xf32>
    %30 = vector.shape_cast %29 : vector<32xf32> to vector<32x1xf32>
    %31 = vector.broadcast %30 : vector<32x1xf32> to vector<32x128xf32>
    %32 = arith.divf %28, %31 : vector<32x128xf32>
    %c0_17 = arith.constant 0 : index
    %c0_18 = arith.constant 0 : index
    %33 = vector.load %arg7[%c0_17, %c0_18] : memref<32x128xf32, #tpu.memory_space<vmem>>, vector<32x128xf32>
    tpu.vector_store %arg7[%c0_17, %c0_18], %32 {strides = array<i32>} : memref<32x128xf32, #tpu.memory_space<vmem>>, vector<32x128xf32>,
    return
  }
  func.func @transform_0(%arg0: i32) -> (i32, i32) {
    %c0_i32 = arith.constant 0 : i32
    %c0_i32_0 = arith.constant 0 : i32
    return %arg0, %c0_i32 : i32, i32
  }
  func.func @transform_1(%arg0: i32) -> (i32, i32) {
    %c0_i32 = arith.constant 0 : i32
    %c0_i32_0 = arith.constant 0 : i32
    return %arg0, %c0_i32 : i32, i32
  }
  func.func @transform_2(%arg0: i32) -> (i32, i32) {
    %c0_i32 = arith.constant 0 : i32
    %c0_i32_0 = arith.constant 0 : i32
    return %arg0, %c0_i32 : i32, i32
  }
  func.func @transform_3(%arg0: i32) -> (i32, i32) {
    %c0_i32 = arith.constant 0 : i32
    %c0_i32_0 = arith.constant 0 : i32
    return %arg0, %c0_i32 : i32, i32
  }
  func.func @transform_4(%arg0: i32) -> (i32, i32) {
    %c0_i32 = arith.constant 0 : i32
    %c0_i32_0 = arith.constant 0 : i32
    %c0_i32_1 = arith.constant 0 : i32
    return %c0_i32, %c0_i32_0 : i32, i32
  }
  func.func @transform_5(%arg0: i32) -> (i32, i32) {
    %c0_i32 = arith.constant 0 : i32
    %c0_i32_0 = arith.constant 0 : i32
    %c0_i32_1 = arith.constant 0 : i32
    return %c0_i32, %c0_i32_0 : i32, i32
  }
  func.func @transform_6(%arg0: i32) -> (i32, i32) {
    %c0_i32 = arith.constant 0 : i32
    %c0_i32_0 = arith.constant 0 : i32
    return %arg0, %c0_i32 : i32, i32
  }
}

</mosaic_0001>

<bundles_post_ra>
// kernel: tpu_custom_call.1
= control target key start
LH: loop header
LB: loop body
LE: loop exit
PB: predicated region body
PF: predicated region fallthrough
CT: control target
= control target key end

     0   :  { %11 = vsyncpa [#allocation3], 0  ;;  %s1396_s0 = inlined_call_operand.hbm [shape: bf16[32,256], index: 0, kind: input, shape index: {}]   ;;  %s1397_s1 = inlined_call_operand.hbm [shape: bf16[32,256], index: 1, kind: input, shape index: {}]   ;;  %s1398_s2 = inlined_call_operand.hbm [shape: bf16[32,256], index: 2, kind: input, shape index: {}]   ;;  %s1399_s3 = inlined_call_operand.hbm [shape: f32[32,128], index: 3, kind: input, shape index: {}]   ;;  %s1400_s4 = inlined_call_operand.hbm [shape: bf16[768,128], index: 4, kind: input, shape index: {}]   ;;  %s1401_s5 = inlined_call_operand.vmem [shape: f32[1,128], index: 5, kind: input, shape index: {}]   ;;  %s1402_s6 = inlined_call_operand.hbm [shape: f32[32,128], index: 6, kind: output, shape index: {}]  }
   0x1   :  { %12 = vsyncpa [#allocation6], 0 }
   0x2   :  { %13 = vsyncpa [#allocation9], 0 }
   0x3   :  { %14 = vsyncpa [#allocation4], 0  ;;  %s1244_s21 = smov [#allocation5]   ;;  %s1245_s23 = smov [#allocation8]  }
   0x4   :  { %s32_s22 = sshll.u32 %s1244_s21, 4  ;;  %s56_s24 = sshll.u32 %s1245_s23, 4  ;;  %s33_s22 = int_to_ptr.vmem [resolvable:$true] %s32_s22  ;;  %s1292_s24 = int_to_ptr.vmem [resolvable:$true] %s56_s24 }
   0x5   :  { %s1104_s27 = scalar_lea.hbm %s1397_s1, 512 }
   0x6   :  { %p1105_p0 = scmp.ne.s32.totalorder %s1397_s1, %s1104_s27  ;;  %p1108_p1 = scmp.lt.u32.totalorder %s1104_s27, %s1397_s1 }
   0x8   :  { %p1110_p2 = pnand %p1108_p1, %p1105_p0 }
   0xa   :  { %1113 = shalt.err (!%p1110_p2)
}
   0xb   :  { %s1114_s8 = scalar_lea.vmem %s33_s22, 512  ;;  %p1119_p4 = scmp.lt.s32.totalorder %s33_s22, %s33_s22 }
   0xc   :  { %p1115_p3 = scmp.ne.s32.totalorder %s33_s22, %s1114_s8  ;;  %p1120_p5 = scmp.lt.s32.totalorder %s1114_s8, %s1114_s8 }
   0xe   :  { %p1121_p6 = por %p1120_p5, %p1119_p4 }
  0x10   :  { %p1122_p7 = pnand %p1121_p6, %p1115_p3 }
  0x12   :  { %1125 = shalt.err (!%p1122_p7)
}
  0x13   :  { %s1246_s9 = smov 128   ;;  %s1247_s10 = smov 8  }
  0x14   :  { %38 = dma.hbm_to_vmem [thread:$0]  %s1397_s1, 512, %s33_s22, [#allocation6], %s1246_s9, %s1246_s9, %s1247_s10  }
  0x15   :  { %s1126_s15 = scalar_lea.hbm %s1399_s3, 512 }
  0x16   :  { %p1127_p8 = scmp.ne.s32.totalorder %s1399_s3, %s1126_s15  ;;  %p1130_p9 = scmp.lt.u32.totalorder %s1126_s15, %s1399_s3 }
  0x18   :  { %p1132_p10 = pnand %p1130_p9, %p1127_p8 }
  0x1a   :  { %1135 = shalt.err (!%p1132_p10)
}
  0x1b   :  { %s1136_s20 = scalar_lea.vmem %s1292_s24, 512  ;;  %p1141_p12 = scmp.lt.s32.totalorder %s1292_s24, %s1292_s24 }
  0x1c   :  { %p1137_p11 = scmp.ne.s32.totalorder %s1292_s24, %s1136_s20  ;;  %p1142_p13 = scmp.lt.s32.totalorder %s1136_s20, %s1136_s20 }
  0x1e   :  { %p1143_p0 = por %p1142_p13, %p1141_p12 }
  0x20   :  { %p1144_p1 = pnand %p1143_p0, %p1137_p11 }
  0x22   :  { %1147 = shalt.err (!%p1144_p1)
}
  0x23   :  { %62 = dma.hbm_to_vmem [thread:$0]  %s1399_s3, 512, %s1292_s24, [#allocation9], %s1246_s9, %s1246_s9, %s1247_s10  }
  0x24   :  { %s1248_s22 = smov [#allocation2]   ;;  %s1249_s25 = smov [#allocation7]  }
  0x25   :  { %s20_s23 = sshll.u32 %s1248_s22, 4  ;;  %s44_s26 = sshll.u32 %s1249_s25, 4  ;;  %s21_s23 = int_to_ptr.vmem [resolvable:$true] %s20_s23  ;;  %s1329_s26 = int_to_ptr.vmem [resolvable:$true] %s44_s26 }
  0x26   :  { %s1148_s29 = scalar_lea.hbm %s1396_s0, 512 }
  0x27   :  { %p1149_p2 = scmp.ne.s32.totalorder %s1396_s0, %s1148_s29  ;;  %p1152_p3 = scmp.lt.u32.totalorder %s1148_s29, %s1396_s0 }
  0x29   :  { %p1154_p4 = pnand %p1152_p3, %p1149_p2 }
  0x2b   :  { %1157 = shalt.err (!%p1154_p4)
}
  0x2c   :  { %s1158_s3 = scalar_lea.vmem %s21_s23, 512  ;;  %p1163_p6 = scmp.lt.s32.totalorder %s21_s23, %s21_s23 }
  0x2d   :  { %p1159_p5 = scmp.ne.s32.totalorder %s21_s23, %s1158_s3  ;;  %p1164_p7 = scmp.lt.s32.totalorder %s1158_s3, %s1158_s3 }
  0x2f   :  { %p1165_p8 = por %p1164_p7, %p1163_p6 }
  0x31   :  { %p1166_p9 = pnand %p1165_p8, %p1159_p5 }
  0x33   :  { %1169 = shalt.err (!%p1166_p9)
}
  0x34   :  { %26 = dma.hbm_to_vmem [thread:$0]  %s1396_s0, 512, %s21_s23, [#allocation3], %s1246_s9, %s1246_s9, %s1247_s10  }
  0x35   :  { %s1170_s15 = scalar_lea.hbm %s1398_s2, 512 }
  0x36   :  { %p1171_p10 = scmp.ne.s32.totalorder %s1398_s2, %s1170_s15  ;;  %p1174_p11 = scmp.lt.u32.totalorder %s1170_s15, %s1398_s2 }
  0x38   :  { %p1176_p12 = pnand %p1174_p11, %p1171_p10 }
  0x3a   :  { %1179 = shalt.err (!%p1176_p12)
}
  0x3b   :  { %s1180_s20 = scalar_lea.vmem %s1329_s26, 512  ;;  %p1185_p0 = scmp.lt.s32.totalorder %s1329_s26, %s1329_s26 }
  0x3c   :  { %p1181_p13 = scmp.ne.s32.totalorder %s1329_s26, %s1180_s20  ;;  %p1186_p1 = scmp.lt.s32.totalorder %s1180_s20, %s1180_s20 }
  0x3e   :  { %p1187_p2 = por %p1186_p1, %p1185_p0 }
  0x40   :  { %p1188_p3 = pnand %p1187_p2, %p1181_p13 }
  0x42   :  { %1191 = shalt.err (!%p1188_p3)
}
  0x43   :  { %50 = dma.hbm_to_vmem [thread:$0]  %s1398_s2, 512, %s1329_s26, [#allocation6], %s1246_s9, %s1246_s9, %s1247_s10  }
  0x44   :  { %s1250_s21 = smov [#allocation10]   ;;  %s1192_s27 = scalar_lea.hbm %s1400_s4, 6144 }
  0x45   :  { %s68_s22 = sshll.u32 %s1250_s21, 4  ;;  %p1193_p4 = scmp.ne.s32.totalorder %s1400_s4, %s1192_s27  ;;  %s69_s22 = int_to_ptr.vmem [resolvable:$true] %s68_s22 }
  0x46   :  { %p1196_p5 = scmp.lt.u32.totalorder %s1192_s27, %s1400_s4 }
  0x48   :  { %p1198_p6 = pnand %p1196_p5, %p1193_p4 }
  0x4a   :  { %1201 = shalt.err (!%p1198_p6)
}
  0x4b   :  { %s1202_s8 = scalar_lea.vmem %s69_s22, 6144  ;;  %p1207_p8 = scmp.lt.s32.totalorder %s69_s22, %s69_s22 }
  0x4c   :  { %p1203_p7 = scmp.ne.s32.totalorder %s69_s22, %s1202_s8  ;;  %p1208_p9 = scmp.lt.s32.totalorder %s1202_s8, %s1202_s8 }
  0x4e   :  { %p1209_p10 = por %p1208_p9, %p1207_p8 }
  0x50   :  { %p1210_p11 = pnand %p1209_p10, %p1203_p7 }
  0x52   :  { %1213 = shalt.err (!%p1210_p11)
}
  0x53   :  { %s1251_s2 = smov 64   ;;  %s1252_s26 = smov 4  }
  0x54   :  { %74 = dma.hbm_to_vmem [thread:$0]  %s1400_s4, 6144, %s69_s22, [#allocation9], %s1251_s2, %s1251_s2, %s1252_s26  }
  0x55   :  { %1236 = dma.done.wait [#allocation3], 512  }
  0x56   :  { %1237 = vsyncadd [#allocation3], 4294966784 }
  0x57   :  { %1238 = dma.done.wait [#allocation6], 1024  }
  0x58   :  { %1239 = vsyncadd [#allocation6], 4294966272 }
  0x59   :  { %1240 = dma.done.wait [#allocation9], 6656  }
  0x5a   :  { %1241 = vsyncadd [#allocation9], 4294960640  ;;  %v1253_v0 = vmov 0   ;;  %v1022_v1 = vld [vmem:[#allocation10 + $0x40] sm:$0xff]   ;;  %v1026_v5 = vld [vmem:[#allocation10 + $0x48] sm:$0xff]  }
  0x5b   :  { %1016 = vset.pattern.permute.xlu0 %v1253_v0  ;;  %1017 = vset.pattern.permute.xlu1 %v1253_v0  ;;  %v1023_v2 = vld [vmem:[#allocation10 + $0xc0] sm:$0xff]   ;;  %v1027_v6 = vld [vmem:[#allocation10 + $0xc8] sm:$0xff]   ;;  %v1030_v9 = vld [vmem:[#allocation10 + $0x50] sm:$0xff]   ;;  %v1254_v0 = vmov 1  }
  0x5c   :  { %903 = vmatprep.subr.bf16.mxu0 %v1022_v1  ;;  %v1024_v3 = vld [vmem:[#allocation10] sm:$0xff]   ;;  %931 = vmatprep.subr.bf16.mxu1 %v1023_v2  ;;  %v1028_v7 = vld [vmem:[#allocation10 + $0x8] sm:$0xff]   ;;  %v1031_v10 = vld [vmem:[#allocation10 + $0xd0] sm:$0xff]   ;;  %v1255_v2 = vmov 2  }
  0x5d   :  { %v1025_v4 = vld [vmem:[#allocation10 + $0x80] sm:$0xff]   ;;  %904 = vmatpush3.bf16.msra.mxu0 %v1024_v3  ;;  %v1029_v8 = vld [vmem:[#allocation10 + $0x88] sm:$0xff]   ;;  %v1032_v11 = vld [vmem:[#allocation10 + $0x10] sm:$0xff]  }
  0x5e   :  { %932 = vmatpush3.bf16.msra.mxu1 %v1025_v4  ;;  %905 = vmatprep.subr.bf16.mxu0 %v1026_v5  ;;  %v1033_v12 = vld [vmem:[#allocation10 + $0x90] sm:$0xff]   ;;  %v1034_v13 = vld [vmem:[#allocation10 + $0x58] sm:$0xff]   ;;  %v1038_v17 = vld [vmem:[#allocation10 + $0x60] sm:$0xff]  }
  0x5f   :  { %933 = vmatprep.subr.bf16.mxu1 %v1027_v6  ;;  %v1035_v14 = vld [vmem:[#allocation10 + $0xd8] sm:$0xff]   ;;  %v1039_v18 = vld [vmem:[#allocation10 + $0xe0] sm:$0xff]   ;;  %v1042_v21 = vld [vmem:[#allocation10 + $0x68] sm:$0xff]  }
  0x60   :  { %v1036_v15 = vld [vmem:[#allocation10 + $0x18] sm:$0xff]   ;;  %v1040_v19 = vld [vmem:[#allocation10 + $0x20] sm:$0xff]   ;;  %v1043_v22 = vld [vmem:[#allocation10 + $0xe8] sm:$0xff]  }
  0x61   :  { %906 = vmatpush3.bf16.msra.mxu0 %v1028_v7  ;;  %v1037_v16 = vld [vmem:[#allocation10 + $0x98] sm:$0xff]   ;;  %v1041_v20 = vld [vmem:[#allocation10 + $0xa0] sm:$0xff]   ;;  %v1044_v23 = vld [vmem:[#allocation10 + $0x28] sm:$0xff]  }
  0x62   :  { %934 = vmatpush3.bf16.msra.mxu1 %v1029_v8  ;;  %907 = vmatprep.subr.bf16.mxu0 %v1030_v9  ;;  %v1045_v24 = vld [vmem:[#allocation10 + $0xa8] sm:$0xff]   ;;  %v1046_v25 = vld [vmem:[#allocation10 + $0x70] sm:$0xff]   ;;  %v1050_v29 = vld [vmem:[#allocation10 + $0x78] sm:$0xff]  }
  0x63   :  { %935 = vmatprep.subr.bf16.mxu1 %v1031_v10  ;;  %v1047_v26 = vld [vmem:[#allocation10 + $0xf0] sm:$0xff]   ;;  %v1051_v30 = vld [vmem:[#allocation10 + $0xf8] sm:$0xff]   ;;  %v1054_v33 = vld [vmem:[#allocation2] ss:$8 sps:$4 sm:$0xff]  }
  0x64   :  { %v1048_v27 = vld [vmem:[#allocation10 + $0x30] sm:$0xff]   ;;  %v1052_v31 = vld [vmem:[#allocation10 + $0x38] sm:$0xff]   ;;  %v1056_v34 = vld [vmem:[#allocation2 + $0x4] ss:$8 sps:$4 sm:$0xff]  }
  0x65   :  { %908 = vmatpush3.bf16.msra.mxu0 %v1032_v11  ;;  %v1049_v28 = vld [vmem:[#allocation10 + $0xb0] sm:$0xff]   ;;  %v1053_v32 = vld [vmem:[#allocation10 + $0xb8] sm:$0xff]   ;;  %v1057_v35 = vld [vmem:[#allocation5] ss:$8 sps:$4 sm:$0xff]   ;;  %281 = vmatprep.mubr.bf16.mxu0 %v1056_v34 }
  0x66   :  { %936 = vmatpush3.bf16.msra.mxu1 %v1033_v12  ;;  %909 = vmatprep.subr.bf16.mxu0 %v1034_v13  ;;  %v1059_v36 = vld [vmem:[#allocation5 + $0x4] ss:$8 sps:$4 sm:$0xff]   ;;  %v1064_v41 = vld [vmem:[#allocation10 + $0x150] sm:$0xff]   ;;  %v1072_v47 = vld [vmem:[#allocation10 + $0x158] sm:$0xff]  }
  0x67   :  { %937 = vmatprep.subr.bf16.mxu1 %v1035_v14  ;;  %v1060_v37 = vld [vmem:[#allocation10 + $0x140] sm:$0xff]   ;;  %506 = vmatprep.mubr.bf16.mxu1 %v1059_v36  ;;  %v1062_v39 = vld [vmem:[#allocation10 + $0x148] sm:$0xff]   ;;  %v1065_v42 = vld [vmem:[#allocation10 + $0x110] sm:$0xff]  }
  0x68   :  { %v1061_v38 = vld [vmem:[#allocation10 + $0x100] sm:$0xff]   ;;  %v1063_v40 = vld [vmem:[#allocation10 + $0x108] sm:$0xff]   ;;  %v1066_v43 = vld [vmem:[#allocation2 + $0x14] ss:$8 sps:$4 sm:$0xff]  }
  0x69   :  { %910 = vmatpush3.bf16.msra.mxu0 %v1036_v15  ;;  %v1068_v44 = vld [vmem:[#allocation5 + $0x14] ss:$8 sps:$4 sm:$0xff]   ;;  %v1070_v45 = vld [vmem:[#allocation2 + $0x10] ss:$8 sps:$4 sm:$0xff]   ;;  %v1074_v49 = vld [vmem:[#allocation10 + $0x160] sm:$0xff]  }
  0x6a   :  { %938 = vmatpush3.bf16.msra.mxu1 %v1037_v16  ;;  %911 = vmatprep.subr.bf16.mxu0 %v1038_v17  ;;  %v1071_v46 = vld [vmem:[#allocation5 + $0x10] ss:$8 sps:$4 sm:$0xff]   ;;  %v1075_v50 = vld [vmem:[#allocation10 + $0x120] sm:$0xff]   ;;  %v1076_v51 = vld [vmem:[#allocation10 + $0x168] sm:$0xff]  }
  0x6b   :  { %939 = vmatprep.subr.bf16.mxu1 %v1039_v18  ;;  %v1073_v48 = vld [vmem:[#allocation10 + $0x118] sm:$0xff]   ;;  %v1077_v52 = vld [vmem:[#allocation10 + $0x128] sm:$0xff]   ;;  %v1078_v54 = vld [vmem:[#allocation10 + $0x170] sm:$0xff]  }
  0x6c   :  { %v1084_v53 = vld [vmem:[#allocation7 + $0x4] ss:$8 sps:$4 sm:$0xff]   ;;  %v1087_v55 = vld [vmem:[#allocation7 + $0x14] ss:$8 sps:$4 sm:$0xff]   ;;  %v1082_v63 = vld [vmem:[#allocation7] ss:$8 sps:$4 sm:$0xff]  }
  0x6d   :  { %912 = vmatpush3.bf16.msra.mxu0 %v1040_v19  ;;  %v93_v56 = vld [vmem:[#allocation8] sm:$0xff]  ;;  %v95_v57 = vld [vmem:[#allocation8 + $0x10] sm:$0xff]  ;;  %v94_v59 = vld [vmem:[#allocation8 + $0x8] sm:$0xff] }
  0x6e   :  { %940 = vmatpush3.bf16.msra.mxu1 %v1041_v20  ;;  %913 = vmatprep.subr.bf16.mxu0 %v1042_v21  ;;  %v1079_v58 = vld [vmem:[#allocation10 + $0x130] sm:$0xff]   ;;  %v1080_v60 = vld [vmem:[#allocation10 + $0x178] sm:$0xff]  }
  0x6f   :  { %941 = vmatprep.subr.bf16.mxu1 %v1043_v22  ;;  %300 = vperm.xlu0 %1016, %v93_v56   ;;  %v96_v61 = vld [vmem:[#allocation8 + $0x18] sm:$0xff] }
  0x70   :  { %310 = vperm.xlu1 %1017, %v95_v57   ;;  %v1081_v62 = vld [vmem:[#allocation10 + $0x138] sm:$0xff]  }
  0x71   :  { %914 = vmatpush3.bf16.msra.mxu0 %v1044_v23  ;;  %v1085_v1 = vld [vmem:[#allocation7 + $0x10] ss:$8 sps:$4 sm:$0xff]  }
  0x72   :  { %942 = vmatpush3.bf16.msra.mxu1 %v1045_v24  ;;  %915 = vmatprep.subr.bf16.mxu0 %v1046_v25 }
  0x73   :  { %943 = vmatprep.subr.bf16.mxu1 %v1047_v26  ;;  %305 = vperm.xlu0 %1016, %v94_v59  }
  0x74   :  { %315 = vperm.xlu1 %1017, %v96_v61  }
  0x75   :  { %916 = vmatpush3.bf16.msra.mxu0 %v1048_v27 }
  0x76   :  { %944 = vmatpush3.bf16.msra.mxu1 %v1049_v28  ;;  %917 = vmatprep.subr.bf16.mxu0 %v1050_v29 }
  0x77   :  { %945 = vmatprep.subr.bf16.mxu1 %v1051_v30  ;;  %1018 = vset.pattern.permute.xlu0 %v1254_v0 }
  0x78   :  { %524 = vperm.xlu0 %1018, %v93_v56   ;;  %1019 = vset.pattern.permute.xlu1 %v1254_v0  ;;  %v902_v0 = vld [vmem:[%s1401_s5] ss:$0 sm:$0xff]  ;;  %s1256_s5 = smov [#allocation11]  }
  0x79   :  { %918 = vmatpush3.bf16.msra.mxu0 %v1052_v31  ;;  %528 = vperm.xlu1 %1019, %v94_v59   ;;  %s828_s12 = sshll.u32 %s1256_s5, 4  ;;  %s829_s12 = int_to_ptr.vmem [resolvable:$true] %s828_s12 }
  0x7a   :  { %946 = vmatpush3.bf16.msra.mxu1 %v1053_v32  ;;  %959 = vmatprep.subr.bf16.mxu0 %v1060_v37  ;;  %s1214_s13 = scalar_lea.vmem %s829_s12, 512  ;;  %p1219_p13 = scmp.lt.s32.totalorder %s829_s12, %s829_s12 }
  0x7b   :  { %987 = vmatprep.subr.bf16.mxu1 %v1060_v37  ;;  %p1215_p12 = scmp.ne.s32.totalorder %s829_s12, %s1214_s13  ;;  %p1220_p0 = scmp.lt.s32.totalorder %s1214_s13, %s1214_s13 }
  0x7c   :  { %282 = vmatmul.mubr.bf16.vlgmr.msra.gmra.mrb[0].mxu0 %v1054_v33  ;;  %536 = vperm.xlu0 %1018, %v96_v61  }
  0x7d   :  { %507 = vmatmul.mubr.bf16.vlgmr.msra.gmra.mrb[0].mxu1 %v1057_v35  ;;  %960 = vmatpush3.bf16.msra.mxu0 %v1061_v38  ;;  %p1221_p1 = por %p1220_p0, %p1219_p13 }
  0x7e   :  { %995 = vmatpush3.bf16.msra.mxu1 %v1061_v38  ;;  %961 = vmatprep.subr.bf16.mxu0 %v1062_v39 }
  0x7f   :  { %988 = vmatprep.subr.bf16.mxu1 %v1062_v39  ;;  %289 = vmatprep.mubr.bf16.mxu0 %v1066_v43  ;;  %p1222_p2 = pnand %p1221_p1, %p1215_p12 }
  0x80   :  { %514 = vmatprep.mubr.bf16.mxu1 %v1068_v44  ;;  %532 = vperm.xlu1 %1019, %v95_v57  }
  0x81   :  { %962 = vmatpush3.bf16.msra.mxu0 %v1063_v40  ;;  %1021 = vset.pattern.permute.xlu0 %v1255_v2 }
  0x82   :  { %996 = vmatpush3.bf16.msra.mxu1 %v1063_v40  ;;  %963 = vmatprep.subr.bf16.mxu0 %v1064_v41 }
  0x83   :  { %989 = vmatprep.subr.bf16.mxu1 %v1064_v41  ;;  %753 = vperm.xlu0 %1021, %v94_v59  }
  0x84   :  { %290 = vmatmul.mubr.bf16.gmra.mrb[4].mxu0 %v1070_v45  ;;  %1020 = vset.pattern.permute.xlu1 %v1255_v2 }
  0x85   :  { %964 = vmatpush3.bf16.msra.mxu0 %v1065_v42  ;;  %515 = vmatmul.mubr.bf16.gmra.mrb[4].mxu1 %v1071_v46 }
  0x86   :  { %997 = vmatpush3.bf16.msra.mxu1 %v1065_v42  ;;  %965 = vmatprep.subr.bf16.mxu0 %v1072_v47 }
  0x87   :  { %990 = vmatprep.subr.bf16.mxu1 %v1072_v47  ;;  %731 = vmatprep.mubr.bf16.mxu0 %v1084_v53 }
  0x88   :  { %739 = vmatprep.mubr.bf16.mxu1 %v1087_v55  ;;  %749 = vperm.xlu1 %1020, %v93_v56  }
  0x89   :  { %966 = vmatpush3.bf16.msra.mxu0 %v1073_v48 }
  0x8a   :  { %998 = vmatpush3.bf16.msra.mxu1 %v1073_v48  ;;  %967 = vmatprep.subr.bf16.mxu0 %v1074_v49 }
  0x8b   :  { %991 = vmatprep.subr.bf16.mxu1 %v1074_v49 }
  0x8c   :  { %757 = vperm.xlu1 %1020, %v95_v57  }
  0x8d   :  { %968 = vmatpush3.bf16.msra.mxu0 %v1075_v50 }
  0x8e   :  { %999 = vmatpush3.bf16.msra.mxu1 %v1075_v50  ;;  %969 = vmatprep.subr.bf16.mxu0 %v1076_v51 }
  0x8f   :  { %992 = vmatprep.subr.bf16.mxu1 %v1076_v51 }
  0x90   :  { %761 = vperm.xlu1 %1020, %v96_v61  }
  0x91   :  { %970 = vmatpush3.bf16.msra.mxu0 %v1077_v52 }
  0x92   :  { %1000 = vmatpush3.bf16.msra.mxu1 %v1077_v52  ;;  %971 = vmatprep.subr.bf16.mxu0 %v1078_v54 }
  0x93   :  { %993 = vmatprep.subr.bf16.mxu1 %v1078_v54 }
  0x95   :  { %972 = vmatpush3.bf16.msra.mxu0 %v1079_v58 }
  0x96   :  { %1001 = vmatpush3.bf16.msra.mxu1 %v1079_v58  ;;  %973 = vmatprep.subr.bf16.mxu0 %v1080_v60 }
  0x97   :  { %994 = vmatprep.subr.bf16.mxu1 %v1080_v60 }
  0x99   :  { %974 = vmatpush3.bf16.msra.mxu0 %v1081_v62 }
  0x9a   :  { %1002 = vmatpush3.bf16.msra.mxu1 %v1081_v62 }
  0x9c   :  { %732 = vmatmul.mubr.bf16.vlgmr.msra.gmra.mrb[8].mxu0 %v1082_v63 }
  0x9d   :  { %740 = vmatmul.mubr.bf16.vlgmr.msra.gmra.mrb[8].mxu1 %v1085_v1 }
  0xee   :  { %v301_v3 = vpop.permute.xlu0 %300 }
  0xef   :  { %v311_v4 = vpop.permute.xlu1 %310 }
  0xf2   :  { %v306_v5 = vpop.permute.xlu0 %305 }
  0xf3   :  { %v316_v6 = vpop.permute.xlu1 %315 }
  0xf7   :  { %v525_v8 = vpop.permute.xlu0 %524 }
  0xf8   :  { %v529_v20 = vpop.permute.xlu1 %528 }
  0xfb   :  { %v537_v40 = vpop.permute.xlu0 %536 }
  0xff   :  { %v533_v28 = vpop.permute.xlu1 %532 }
 0x102   :  { %v754_v48 = vpop.permute.xlu0 %753 }
 0x107   :  { %v750_v47 = vpop.permute.xlu1 %749 }
 0x10b   :  { %v758_v49 = vpop.permute.xlu1 %757 }
 0x10f   :  { %v762_v1 = vpop.permute.xlu1 %761 }
 0x14f   :  { %v919_v7 = vpop.f32.mrb[0].mxu0 }
 0x150   :  { %v947_v9 = vpop.f32.mrb[0].mxu1  ;;  %v920_v10 = vpop.f32.mrb[1].mxu0 }
 0x151   :  { %v921_v11 = vadd.f32 %v920_v10, %v919_v7  ;;  %v948_v12 = vpop.f32.mrb[1].mxu1  ;;  %v922_v13 = vpop.f32.mrb[2].mxu0 }
 0x152   :  { %v949_v14 = vadd.f32 %v948_v12, %v947_v9  ;;  %v950_v15 = vpop.f32.mrb[2].mxu1  ;;  %v923_v16 = vpop.f32.mrb[3].mxu0 }
 0x153   :  { %v318_v17 = vmul.f32 %v921_v11, %v301_v3  ;;  %v924_v18 = vadd.f32 %v923_v16, %v922_v13  ;;  %v951_v19 = vpop.f32.mrb[3].mxu1 }
 0x154   :  { %v952_v21 = vadd.f32 %v951_v19, %v950_v15  ;;  %v539_v22 = vmul.f32 %v949_v14, %v525_v8 }
 0x155   :  { %v319_v23 = vmul.f32 %v924_v18, %v306_v5 }
 0x156   :  { %v543_v24 = vadd.f32 %v539_v22, %v318_v17  ;;  %v540_v25 = vmul.f32 %v952_v21, %v529_v20 }
 0x157   :  { %v925_v27 = vpop.f32.mrb[4].mxu0 }
 0x158   :  { %v544_v26 = vadd.f32 %v540_v25, %v319_v23  ;;  %v953_v29 = vpop.f32.mrb[4].mxu1  ;;  %v926_v30 = vpop.f32.mrb[5].mxu0 }
 0x159   :  { %v927_v31 = vadd.f32 %v926_v30, %v925_v27  ;;  %v954_v32 = vpop.f32.mrb[5].mxu1  ;;  %v928_v33 = vpop.f32.mrb[6].mxu0 }
 0x15a   :  { %v955_v34 = vadd.f32 %v954_v32, %v953_v29  ;;  %v956_v35 = vpop.f32.mrb[6].mxu1  ;;  %v929_v36 = vpop.f32.mrb[7].mxu0 }
 0x15b   :  { %v320_v37 = vmul.f32 %v927_v31, %v311_v4  ;;  %v930_v38 = vadd.f32 %v929_v36, %v928_v33  ;;  %v957_v39 = vpop.f32.mrb[7].mxu1 }
 0x15c   :  { %v958_v41 = vadd.f32 %v957_v39, %v956_v35  ;;  %v541_v42 = vmul.f32 %v955_v34, %v533_v28 }
 0x15d   :  { %v321_v43 = vmul.f32 %v930_v38, %v316_v6 }
 0x15e   :  { %v545_v44 = vadd.f32 %v541_v42, %v320_v37  ;;  %v542_v45 = vmul.f32 %v958_v41, %v537_v40 }
 0x160   :  { %v546_v46 = vadd.f32 %v542_v45, %v321_v43 }
 0x16f   :  { %v975_v50 = vpop.f32.mrb[8].mxu0 }
 0x170   :  { %v981_v51 = vpop.f32.mrb[8].mxu1  ;;  %v976_v52 = vpop.f32.mrb[9].mxu0 }
 0x171   :  { %v977_v53 = vadd.f32 %v976_v52, %v975_v50  ;;  %v982_v54 = vpop.f32.mrb[9].mxu1  ;;  %v978_v55 = vpop.f32.mrb[10].mxu0 }
 0x172   :  { %v983_v56 = vadd.f32 %v982_v54, %v981_v51  ;;  %v984_v57 = vpop.f32.mrb[10].mxu1  ;;  %v979_v58 = vpop.f32.mrb[11].mxu0 }
 0x173   :  { %v764_v59 = vmul.f32 %v977_v53, %v750_v47  ;;  %v980_v60 = vadd.f32 %v979_v58, %v978_v55  ;;  %v985_v61 = vpop.f32.mrb[11].mxu1 }
 0x174   :  { %v766_v62 = vmul.f32 %v983_v56, %v758_v49  ;;  %v986_v63 = vadd.f32 %v985_v61, %v984_v57 }
 0x175   :  { %v765_v2 = vmul.f32 %v980_v60, %v754_v48  ;;  %v768_v3 = vadd.f32 %v764_v59, %v543_v24 }
 0x176   :  { %v767_v4 = vmul.f32 %v986_v63, %v762_v1  ;;  %v770_v5 = vadd.f32 %v766_v62, %v545_v44 }
 0x177   :  { %v769_v6 = vadd.f32 %v765_v2, %v544_v26  ;;  %v779_v7 = vadd.f32 %v902_v0, %v768_v3 }
 0x178   :  { %v771_v8 = vadd.f32 %v767_v4, %v546_v46  ;;  %v781_v10 = vadd.f32 %v902_v0, %v770_v5 }
 0x179   :  { %783 = vmax.xlane.f32.xlu0 %v779_v7  ;;  %v780_v9 = vadd.f32 %v902_v0, %v769_v6 }
 0x17a   :  { %v782_v11 = vadd.f32 %v902_v0, %v771_v8 }
 0x17b   :  { %785 = vmax.xlane.f32.xlu1 %v780_v9 }
 0x17d   :  { %787 = vmax.xlane.f32.xlu0 %v781_v10 }
 0x181   :  { %789 = vmax.xlane.f32.xlu0 %v782_v11 }
 0x206   :  { %v784_v12 = vpop.xlane.xlu0 %783 }
 0x207   :  { %v791_v13 = vsub.f32 %v779_v7, %v784_v12 }
 0x208   :  { %v786_v14 = vpop.xlane.xlu1 %785 }
 0x209   :  { %v795_v15 = vmul.f32 1.442695, %v791_v13  ;;  %v792_v16 = vsub.f32 %v780_v9, %v786_v14 }
 0x20a   :  { %v788_v17 = vpop.xlane.xlu0 %787 }
 0x20b   :  { %1088 = vpow2.f32 %v795_v15  ;;  %v797_v18 = vmul.f32 1.442695, %v792_v16  ;;  %v793_v19 = vsub.f32 %v781_v10, %v788_v17 }
 0x20d   :  { %1090 = vpow2.f32 %v797_v18  ;;  %v799_v20 = vmul.f32 1.442695, %v793_v19 }
 0x20e   :  { %v790_v21 = vpop.xlane.xlu0 %789 }
 0x20f   :  { %1092 = vpow2.f32 %v799_v20  ;;  %v794_v22 = vsub.f32 %v782_v11, %v790_v21 }
 0x211   :  { %v801_v23 = vmul.f32 1.442695, %v794_v22 }
 0x213   :  { %1094 = vpow2.f32 %v801_v23 }
 0x215   :  { %v1089_v24 = vpop.eup %1088 }
 0x216   :  { %803 = vadd.xlane.f32.xlu1 %v1089_v24 }
 0x217   :  { %v1091_v25 = vpop.eup %1090 }
 0x218   :  { %805 = vadd.xlane.f32.xlu0 %v1091_v25 }
 0x219   :  { %v1093_v26 = vpop.eup %1092 }
 0x21a   :  { %807 = vadd.xlane.f32.xlu1 %v1093_v26 }
 0x21d   :  { %v1095_v27 = vpop.eup %1094 }
 0x21e   :  { %809 = vadd.xlane.f32.xlu0 %v1095_v27 }
 0x2a3   :  { %v804_v28 = vpop.xlane.xlu1 %803 }
 0x2a4   :  { %1096 = vrcp.f32 %v804_v28 }
 0x2a5   :  { %v806_v29 = vpop.xlane.xlu0 %805 }
 0x2a6   :  { %1098 = vrcp.f32 %v806_v29 }
 0x2a7   :  { %v808_v30 = vpop.xlane.xlu1 %807 }
 0x2a8   :  { %1100 = vrcp.f32 %v808_v30 }
 0x2ab   :  { %v810_v31 = vpop.xlane.xlu0 %809 }
 0x2ac   :  { %1102 = vrcp.f32 %v810_v31 }
 0x2ae   :  { %v1097_v32 = vpop.eup %1096 }
 0x2af   :  { %v812_v33 = vmul.f32 %v1097_v32, %v1089_v24 }
 0x2b0   :  { %v1099_v34 = vpop.eup %1098 }
 0x2b1   :  { %v814_v35 = vmul.f32 %v1099_v34, %v1091_v25  ;;  %819 = vst [vmem:[#allocation11] sm:$0xff] %v812_v33 }
 0x2b2   :  { %v1101_v36 = vpop.eup %1100 }
 0x2b3   :  { %v816_v37 = vmul.f32 %v1101_v36, %v1093_v26  ;;  %820 = vst [vmem:[#allocation11 + $0x8] sm:$0xff] %v814_v35 }
 0x2b5   :  { %821 = vst [vmem:[#allocation11 + $0x10] sm:$0xff] %v816_v37 }
 0x2b6   :  { %v1103_v38 = vpop.eup %1102 }
 0x2b7   :  { %v818_v39 = vmul.f32 %v1103_v38, %v1095_v27 }
 0x2b9   :  { %822 = vst [vmem:[#allocation11 + $0x18] sm:$0xff] %v818_v39 }
 0x2ba   :  { %1225 = shalt.err (!%p1222_p2)
}
 0x2bb   :  { %s1226_s16 = scalar_lea.hbm %s1402_s6, 512 }
 0x2bc   :  { %p1227_p3 = scmp.ne.s32.totalorder %s1402_s6, %s1226_s16  ;;  %p1230_p4 = scmp.lt.u32.totalorder %s1226_s16, %s1402_s6 }
 0x2be   :  { %p1232_p5 = pnand %p1230_p4, %p1227_p3 }
 0x2c0   :  { %1235 = shalt.err (!%p1232_p5)
}
 0x2c1   :  { %834 = dma.vmem_to_hbm [thread:$0]  %s829_s12, 512, %s1402_s6, [#allocation4], %s1246_s9, %s1246_s9, %s1247_s10  }
 0x2c2   :  { %1242 = dma.done.wait [#allocation4], 512  }
 0x2c3   :  { %1243 = vsyncadd [#allocation4], 4294966784 }
 0x2c4   :  { %838 = vsyncpa [#allocation3], 1 }
 0x2c5   :  { %839 = vsyncpa [#allocation6], 1 }
 0x2c6   :  { %840 = vsyncpa [#allocation9], 1 }
 0x2c7   :  { %841 = vsyncpa [#allocation4], 1 }

</bundles_post_ra>
